<compile_context>
chip_gen: v5e
topology: v5e:2x2
jax: 0.10.0
libtpu: 0.0.40
codegen_flags: <defaults>
</compile_context>

<pallas_src>
import functools
import re

import numpy as np
import jax
import jax.numpy as jnp
from jax import lax
from jax.experimental import pallas as pl
from jax.experimental.pallas import tpu as pltpu

LANE = 128
SUBLANE = 8


def _tpu_generation():
    """Best-effort TPU generation (5, 6, 7, ...) from device_kind; None if unknown."""
    try:
        kind = str(jax.devices()[0].device_kind)
    except Exception:
        return None
    m = re.search(r"(\d+)", kind)
    return int(m.group(1)) if m else None


def _vmem_capacity_bytes(gen):
    try:
        return int(getattr(pltpu.get_tpu_info(), "vmem_capacity_bytes"))
    except Exception:
        return (64 if gen == 7 else 128) * 2**20


# ----------------------------------------------------------------------------
# AvgPool2d(kernel_size=stride, stride=stride, padding=0, ceil_mode=True)
# Pure-JAX glue (cheap reduction). Matches PyTorch: edge windows created by
# ceil_mode are averaged over the valid elements only (padding=0).
# ----------------------------------------------------------------------------
def avg_pool_ceil(x_nhwc, s):
    if s == 1:
        return x_nhwc
    N, H, W, C = x_nhwc.shape
    Ho = -(-H // s)
    Wo = -(-W // s)
    xp = jnp.pad(x_nhwc, ((0, 0), (0, Ho * s - H), (0, Wo * s - W), (0, 0)))
    xs = xp.reshape(N, Ho, s, Wo, s, C).sum(axis=(2, 4))
    cnt_h = jnp.minimum(s, H - jnp.arange(Ho) * s).astype(x_nhwc.dtype)
    cnt_w = jnp.minimum(s, W - jnp.arange(Wo) * s).astype(x_nhwc.dtype)
    div = cnt_h[:, None] * cnt_w[None, :]
    return xs / div[None, :, :, None]


# ----------------------------------------------------------------------------
# Kernel A (small Cin): im2col patch cached in a VMEM scratch, built only when
# the Cout-tile index c == 0, then a single MXU matmul per (row tile, Cout tile).
# ----------------------------------------------------------------------------
def _conv_patch_kernel(x_ref, w_ref, b_ref, o_ref, patch_ref, *, k, th, wp, apply_act):
    # x_ref:     (1, Hin, Win, Cin)   zero-padded pooled frame (block index depends on n only)
    # w_ref:     (Cin*k*k, TN)        conv weights with BN scale folded in (one Cout tile)
    # b_ref:     (1, TN)              folded BN bias
    # o_ref:     (1, th, wp, Cblk)    output tile (Cblk = TN, or true Cout when Cout < TN)
    # patch_ref: (th*wp, Cin*k*k)     im2col scratch, persists across Cout tiles
    cin = x_ref.shape[3]
    cout = o_ref.shape[3]
    r = pl.program_id(1)
    c = pl.program_id(2)
    row0 = r * th
    if th % SUBLANE == 0:
        row0 = pl.multiple_of(row0, SUBLANE)

    @pl.when(c == 0)
    def _build_patch():
        for dy in range(k):
            for dx in range(k):
                j = dy * k + dx
                tap = x_ref[0, pl.ds(row0 + dy, th), dx:dx + wp, :]
                patch_ref[:, j * cin:(j + 1) * cin] = tap.reshape(th * wp, cin)

    y = jnp.dot(patch_ref[...], w_ref[...], preferred_element_type=jnp.float32)
    y = y + b_ref[...]                         # f32 epilogue (safe on v5e too)
    if apply_act:
        y = jnp.maximum(y, 0.0)
    o_ref[...] = y[:, :cout].reshape(1, th, wp, cout).astype(o_ref.dtype)


# ----------------------------------------------------------------------------
# Kernel B (large Cin or 1x1 conv): no im2col concatenation; the k*k taps are
# k*k separate MXU matmuls (K=Cin each) accumulated in f32.
# ----------------------------------------------------------------------------
def _conv_acc_kernel(x_ref, w_ref, b_ref, o_ref, *, k, th, wp, apply_act):
    cin = x_ref.shape[3]
    cout = o_ref.shape[3]
    tn = w_ref.shape[1]
    r = pl.program_id(1)
    row0 = r * th
    if th % SUBLANE == 0:
        row0 = pl.multiple_of(row0, SUBLANE)

    y = jnp.zeros((th * wp, tn), jnp.float32)
    for dy in range(k):
        for dx in range(k):
            j = dy * k + dx
            tap = x_ref[0, pl.ds(row0 + dy, th), dx:dx + wp, :].reshape(th * wp, cin)
            y = y + jnp.dot(tap, w_ref[j * cin:(j + 1) * cin, :],
                            preferred_element_type=jnp.float32)
    y = y + b_ref[...]
    if apply_act:
        y = jnp.maximum(y, 0.0)
    o_ref[...] = y[:, :cout].reshape(1, th, wp, cout).astype(o_ref.dtype)


def conv_bn_act_with_pool(
    x_nchw,
    weight,                      # (Cout, Cin, k, k), PyTorch layout, bias=False
    gamma, beta,                 # (Cout,) BN affine
    running_mean, running_var,   # (Cout,) BN running stats (eval mode)
    *,
    stride,
    kernel_size,
    act=None,
    groups=1,
    eps=1e-5,
    row_block=None,              # output rows per grid step (ceil grid handles any Hp)
    compute_dtype=None,          # None -> bfloat16 MXU operands, f32 accumulation
    single_buffer_input=None,    # None -> auto (single-buffer the frame if it dominates VMEM)
):
    if groups != 1:
        # TODO(synk): grouped convolution (groups > 1) not implemented.
        raise NotImplementedError("groups != 1 is not supported")

    if compute_dtype is None:
        compute_dtype = jnp.bfloat16

    N, Cin, H, W = map(int, x_nchw.shape)
    Cout = int(weight.shape[0])
    k = int(kernel_size)
    p = (k - 1) // 2
    # TODO(synk): for even kernel_size PyTorch's symmetric padding=(k-1)//2 trims the last
    #             row/col differently; only odd k (the ResNet-vd case) is validated here.

    gen = _tpu_generation() or 6
    vmem_cap = _vmem_capacity_bytes(gen)

    # ---- NCHW -> NHWC, AvgPool (PyTorch ceil_mode=True semantics), SAME zero pad ------
    # TODO(synk): pool/pad/transposes are wrapper-side HBM passes; fusing them into the
    #             kernel (halo DMA + zero-init scratch, NCHW-direct output) would cut
    #             HBM traffic further for this memory-bound op.
    x = jnp.transpose(x_nchw, (0, 2, 3, 1))
    x = avg_pool_ceil(x, stride)
    Hp, Wp = int(x.shape[1]), int(x.shape[2])

    # ---- Fold eval-mode BN into the conv: scale into weights, keep only the bias add --
    scale = (gamma.astype(jnp.float32) /
             jnp.sqrt(running_var.astype(jnp.float32) + eps))
    bias = beta.astype(jnp.float32) - running_mean.astype(jnp.float32) * scale

    K = Cin * k * k
    # (Cout, Cin, kh, kw) -> (kh, kw, Cin, Cout) -> (K, Cout); columns scaled by BN scale.
    w_mat = jnp.transpose(weight.astype(jnp.float32), (2, 3, 1, 0)).reshape(K, Cout)
    w_mat = w_mat * scale[None, :]

    # ---- Cout tiling: TN=256 fills the 256-wide MXU on v6e/v7x; TN=128 on v5e ---------
    Cout_p = -(-Cout // LANE) * LANE
    TN = 256 if (gen >= 6 and Cout_p % 256 == 0) else LANE
    C = Cout_p // TN
    if Cout_p != Cout:
        w_mat = jnp.pad(w_mat, ((0, 0), (0, Cout_p - Cout)))
        bias = jnp.pad(bias, (0, Cout_p - Cout))
    w_mat = w_mat.astype(compute_dtype)
    bias2 = bias.reshape(1, Cout_p).astype(jnp.float32)

    # Small Cout (single tile): write the true channel count (masked stores) rather than
    # inflating the dominant HBM write stream + a post-kernel slice.
    out_C = Cout if C == 1 else Cout_p
    out_blk_C = out_C if C == 1 else TN

    # im2col strategy: cache the patch only when Cin is small; for Cin >= 128 (or 1x1
    # convs) accumulate per-tap matmuls instead (no concat, no patch VMEM).
    use_patch = (k > 1) and (Cin < 128)

    out_dtype = x_nchw.dtype
    in_isz = jnp.dtype(compute_dtype).itemsize
    out_isz = jnp.dtype(out_dtype).itemsize

    # ---- Row tiling (MXU M): target ~512-1024 output elements per tile ----------------
    def vmem_est(th_, in_bufs=2):
        r_ = -(-Hp // th_)
        in_blk = (r_ * th_ + 2 * p) * (Wp + 2 * p) * Cin * in_isz
        w_blk = K * TN * in_isz
        out_blk = th_ * Wp * out_blk_C * out_isz
        patch = th_ * Wp * K * in_isz if use_patch else 0
        tmp = 2 * th_ * Wp * TN * 4          # matmul result + f32 epilogue temporaries
        return in_bufs * in_blk + 2 * (w_blk + out_blk + TN * 4) + patch + tmp

    if row_block is None:
        target_elems = 512 if gen >= 7 else 1024
        th = max(SUBLANE, (target_elems // max(Wp, 1)) // SUBLANE * SUBLANE)
        th = min(th, max(SUBLANE, -(-Hp // SUBLANE) * SUBLANE))
        while th > SUBLANE and vmem_est(th) > int(0.7 * vmem_cap):
            th -= SUBLANE
        TH = int(th)
    else:
        TH = int(row_block)

    R = -(-Hp // TH)                 # ceil grid; ragged tail rows computed then sliced off
    Hp_out = R * TH
    Hin = Hp_out + 2 * p
    Win = Wp + 2 * p

    x_pad = jnp.pad(x, ((0, 0), (p, p + (Hp_out - Hp)), (p, p), (0, 0)))
    x_pad = x_pad.astype(compute_dtype)

    # ---- VMEM budgeting ----------------------------------------------------------------
    in_frame_bytes = Hin * Win * Cin * in_isz
    if single_buffer_input is None:
        single_buffer_input = (2 * in_frame_bytes) > (vmem_cap // 4)
    in_bufs = 1 if single_buffer_input else 2
    est = vmem_est(TH, in_bufs=in_bufs)
    frac = 0.8 if gen >= 7 else 0.9
    vmem_limit = int(min(max(32 * 2**20, int(1.5 * est)), frac * vmem_cap))

    cost = pl.CostEstimate(
        flops=int(2 * N * Hp_out * Wp * K * Cout_p),
        transcendentals=0,
        bytes_accessed=int(
            N * in_frame_bytes
            + N * R * K * Cout_p * in_isz + Cout_p * 4
            + N * Hp_out * Wp * out_C * out_isz),
    )

    x_spec_kwargs = {}
    if single_buffer_input:
        # The frame's block index only depends on n; single-buffering halves its VMEM
        # footprint (important under v7x's 64 MiB) at the cost of one exposed DMA per n.
        x_spec_kwargs["pipeline_mode"] = pl.Buffered(1)
    x_spec = pl.BlockSpec((1, Hin, Win, Cin), lambda n, r, c: (n, 0, 0, 0),
                          **x_spec_kwargs)

    if use_patch:
        kernel = functools.partial(_conv_patch_kernel, k=k, th=TH, wp=Wp,
                                   apply_act=(act is not None))
        scratch = (pltpu.VMEM((TH * Wp, K), compute_dtype),)
    else:
        kernel = functools.partial(_conv_acc_kernel, k=k, th=TH, wp=Wp,
                                   apply_act=(act is not None))
        scratch = ()

    out_nhwc = pl.pallas_call(
        kernel,
        out_shape=jax.ShapeDtypeStruct((N, Hp_out, Wp, out_C), out_dtype),
        grid_spec=pltpu.PrefetchScalarGridSpec(
            num_scalar_prefetch=0,
            # c innermost ("arbitrary"): the im2col patch built at c == 0 is reused for
            # every Cout tile of the same row tile; n/r stay parallel for megacore.
            grid=(N, R, C),
            in_specs=[
                x_spec,
                pl.BlockSpec((K, TN), lambda n, r, c: (0, c)),
                pl.BlockSpec((1, TN), lambda n, r, c: (0, c)),
            ],
            out_specs=pl.BlockSpec((1, TH, Wp, out_blk_C),
                                   lambda n, r, c: (n, r, 0, c)),
            scratch_shapes=scratch,
        ),
        compiler_params=pltpu.CompilerParams(
            dimension_semantics=("parallel", "parallel", "arbitrary"),
            vmem_limit_bytes=vmem_limit,
        ),
        cost_estimate=cost,
    )(x_pad, w_mat, bias2)

    out = out_nhwc
    if Hp_out != Hp:
        out = out[:, :Hp]
    if out_C != Cout:
        out = out[..., :Cout]
    # NHWC -> NCHW (PyTorch output layout).
    return jnp.transpose(out, (0, 3, 1, 2))


# ----------------------------------------------------------------------------
# Pure-JAX reference: pool -> conv (HIGHEST precision) -> folded eval-mode BN -> relu
# ----------------------------------------------------------------------------
def _reference(x_nchw, weight, gamma, beta, rm, rv, *, stride, k, act, eps=1e-5):
    p = (k - 1) // 2
    x = avg_pool_ceil(jnp.transpose(x_nchw, (0, 2, 3, 1)), stride)
    y = lax.conv_general_dilated(
        x, jnp.transpose(weight, (2, 3, 1, 0)),      # HWIO
        window_strides=(1, 1), padding=((p, p), (p, p)),
        dimension_numbers=("NHWC", "HWIO", "NHWC"),
        precision=lax.Precision.HIGHEST)
    scale = gamma / jnp.sqrt(rv + eps)
    y = y * scale + (beta - rm * scale)
    if act is not None:
        y = jnp.maximum(y, 0.0)
    return jnp.transpose(y, (0, 3, 1, 2))


def _check(key, *, N, Cin, H, W, Cout, k, stride, act, compute_dtype,
           row_block=None, rtol=1e-4, atol=1e-4, tag=""):
    ks = jax.random.split(key, 6)
    x = jax.random.normal(ks[0], (N, Cin, H, W), jnp.float32)
    weight = 0.1 * jax.random.normal(ks[1], (Cout, Cin, k, k), jnp.float32)
    gamma = 1.0 + 0.1 * jax.random.normal(ks[2], (Cout,), jnp.float32)
    beta = 0.1 * jax.random.normal(ks[3], (Cout,), jnp.float32)
    rm = 0.1 * jax.random.normal(ks[4], (Cout,), jnp.float32)
    rv = jnp.abs(jax.random.normal(ks[5], (Cout,), jnp.float32)) + 0.5

    out = conv_bn_act_with_pool(
        x, weight, gamma, beta, rm, rv,
        stride=stride, kernel_size=k, act=act,
        row_block=row_block, compute_dtype=compute_dtype)
    out = jax.block_until_ready(out)

    ref = _reference(x, weight, gamma, beta, rm, rv, stride=stride, k=k, act=act)
    np.testing.assert_allclose(np.asarray(out), np.asarray(ref),
                               rtol=rtol, atol=atol, err_msg=tag)


if __name__ == "__main__":
    key = jax.random.PRNGKey(0)
    k1, k2, k3 = jax.random.split(key, 3)

    # 1) Module-default small config (in=4, out=8, k=3, stride=2, relu), f32 compute.
    _check(k1, N=2, Cin=4, H=16, W=16, Cout=8, k=3, stride=2, act="relu",
           compute_dtype=jnp.float32, rtol=1e-4, atol=1e-4, tag="f32 small-Cout")

    # 2) Same config on the default bf16 fast path (validates bf16 operands + f32 acc).
    _check(k1, N=2, Cin=4, H=16, W=16, Cout=8, k=3, stride=2, act="relu",
           compute_dtype=None, rtol=3e-2, atol=3e-2, tag="bf16 small-Cout")

    # 3) Large-Cin accumulate path (no im2col concat), no activation, f32.
    _check(k2, N=2, Cin=128, H=8, W=8, Cout=256, k=3, stride=1, act=None,
           compute_dtype=jnp.float32, rtol=1e-3, atol=1e-3, tag="f32 Cin=128 acc-path")

    # 4) Multiple Cout tiles (patch reuse across c), ragged ceil row grid, bf16 + relu.
    _check(k3, N=1, Cin=4, H=20, W=12, Cout=512, k=3, stride=2, act="relu",
           compute_dtype=None, row_block=8, rtol=3e-2, atol=3e-2,
           tag="bf16 ragged rows, multi Cout tiles")

    print("KERNEL_OK")
</pallas_src>

<mosaic_0001>
module attributes {stable_mosaic.version = 11 : i64} {
  func.func @_conv_patch_kernel(%arg0: i32, %arg1: i32, %arg2: i32, %arg3: memref<1x10x10x4xf32, #tpu.memory_space<vmem>>, %arg4: memref<36x128xf32, #tpu.memory_space<vmem>>, %arg5: memref<1x128xf32, #tpu.memory_space<vmem>>, %arg6: memref<1x8x8x8xf32, #tpu.memory_space<vmem>>, %arg7: memref<64x36xf32, #tpu.memory_space<vmem>>) attributes {dimension_semantics = [#tpu.dimension_semantics<parallel>, #tpu.dimension_semantics<parallel>, #tpu.dimension_semantics<arbitrary>], iteration_bounds = array<i64: 2, 1, 1>, scalar_prefetch = 0 : i64, scratch_operands = 1 : i64, tpu.core_type = #tpu.core_type<tc>, window_params = [{transform_indices = @transform_0, window_bounds = array<i64: 1, 10, 10, 4>}, {transform_indices = @transform_1, window_bounds = array<i64: 36, 128>}, {transform_indices = @transform_2, window_bounds = array<i64: 1, 128>}, {transform_indices = @transform_3, window_bounds = array<i64: 1, 8, 8, 8>}]} {
    %c8_i32 = arith.constant 8 : i32
    %0 = arith.muli %arg1, %c8_i32 : i32
    %1 = tpu.assume_multiple %0, 8 : i32
    %c0_i32 = arith.constant 0 : i32
    %2 = arith.cmpi eq, %arg2, %c0_i32 : i32
    %3 = arith.extui %2 : i1 to i32
    %c0_i32_0 = arith.constant 0 : i32
    %4 = arith.cmpi ne, %3, %c0_i32_0 : i32
    scf.if %4 {
      %c0_i32_11 = arith.constant 0 : i32
      %16 = arith.addi %1, %c0_i32_11 : i32
      %c0_12 = arith.constant 0 : index
      %17 = arith.index_cast %16 : i32 to index
      %c0_13 = arith.constant 0 : index
      %c0_14 = arith.constant 0 : index
      %18 = vector.load %arg3[%c0_12, %17, %c0_13, %c0_14] : memref<1x10x10x4xf32, #tpu.memory_space<vmem>>, vector<1x8x8x4xf32>
      %19 = vector.shape_cast %18 : vector<1x8x8x4xf32> to vector<8x8x4xf32>
      %20 = vector.shape_cast %19 : vector<8x8x4xf32> to vector<64x4xf32>
      %c0_15 = arith.constant 0 : index
      %c0_16 = arith.constant 0 : index
      %21 = vector.load %arg7[%c0_15, %c0_16] : memref<64x36xf32, #tpu.memory_space<vmem>>, vector<64x4xf32>
      tpu.vector_store %arg7[%c0_15, %c0_16], %20 {strides = array<i32>} : memref<64x36xf32, #tpu.memory_space<vmem>>, vector<64x4xf32>,
      %c0_i32_17 = arith.constant 0 : i32
      %22 = arith.addi %1, %c0_i32_17 : i32
      %c0_18 = arith.constant 0 : index
      %23 = arith.index_cast %22 : i32 to index
      %c1 = arith.constant 1 : index
      %c0_19 = arith.constant 0 : index
      %24 = vector.load %arg3[%c0_18, %23, %c1, %c0_19] : memref<1x10x10x4xf32, #tpu.memory_space<vmem>>, vector<1x8x8x4xf32>
      %25 = vector.shape_cast %24 : vector<1x8x8x4xf32> to vector<8x8x4xf32>
      %26 = vector.shape_cast %25 : vector<8x8x4xf32> to vector<64x4xf32>
      %c0_20 = arith.constant 0 : index
      %c4 = arith.constant 4 : index
      %27 = vector.load %arg7[%c0_20, %c4] : memref<64x36xf32, #tpu.memory_space<vmem>>, vector<64x4xf32>
      tpu.vector_store %arg7[%c0_20, %c4], %26 {strides = array<i32>} : memref<64x36xf32, #tpu.memory_space<vmem>>, vector<64x4xf32>,
      %c0_i32_21 = arith.constant 0 : i32
      %28 = arith.addi %1, %c0_i32_21 : i32
      %c0_22 = arith.constant 0 : index
      %29 = arith.index_cast %28 : i32 to index
      %c2 = arith.constant 2 : index
      %c0_23 = arith.constant 0 : index
      %30 = vector.load %arg3[%c0_22, %29, %c2, %c0_23] : memref<1x10x10x4xf32, #tpu.memory_space<vmem>>, vector<1x8x8x4xf32>
      %31 = vector.shape_cast %30 : vector<1x8x8x4xf32> to vector<8x8x4xf32>
      %32 = vector.shape_cast %31 : vector<8x8x4xf32> to vector<64x4xf32>
      %c0_24 = arith.constant 0 : index
      %c8 = arith.constant 8 : index
      %33 = vector.load %arg7[%c0_24, %c8] : memref<64x36xf32, #tpu.memory_space<vmem>>, vector<64x4xf32>
      tpu.vector_store %arg7[%c0_24, %c8], %32 {strides = array<i32>} : memref<64x36xf32, #tpu.memory_space<vmem>>, vector<64x4xf32>,
      %c1_i32 = arith.constant 1 : i32
      %34 = arith.addi %1, %c1_i32 : i32
      %c0_25 = arith.constant 0 : index
      %35 = arith.index_cast %34 : i32 to index
      %c0_26 = arith.constant 0 : index
      %c0_27 = arith.constant 0 : index
      %36 = vector.load %arg3[%c0_25, %35, %c0_26, %c0_27] : memref<1x10x10x4xf32, #tpu.memory_space<vmem>>, vector<1x8x8x4xf32>
      %37 = vector.shape_cast %36 : vector<1x8x8x4xf32> to vector<8x8x4xf32>
      %38 = vector.shape_cast %37 : vector<8x8x4xf32> to vector<64x4xf32>
      %c0_28 = arith.constant 0 : index
      %c12 = arith.constant 12 : index
      %39 = vector.load %arg7[%c0_28, %c12] : memref<64x36xf32, #tpu.memory_space<vmem>>, vector<64x4xf32>
      tpu.vector_store %arg7[%c0_28, %c12], %38 {strides = array<i32>} : memref<64x36xf32, #tpu.memory_space<vmem>>, vector<64x4xf32>,
      %c1_i32_29 = arith.constant 1 : i32
      %40 = arith.addi %1, %c1_i32_29 : i32
      %c0_30 = arith.constant 0 : index
      %41 = arith.index_cast %40 : i32 to index
      %c1_31 = arith.constant 1 : index
      %c0_32 = arith.constant 0 : index
      %42 = vector.load %arg3[%c0_30, %41, %c1_31, %c0_32] : memref<1x10x10x4xf32, #tpu.memory_space<vmem>>, vector<1x8x8x4xf32>
      %43 = vector.shape_cast %42 : vector<1x8x8x4xf32> to vector<8x8x4xf32>
      %44 = vector.shape_cast %43 : vector<8x8x4xf32> to vector<64x4xf32>
      %c0_33 = arith.constant 0 : index
      %c16 = arith.constant 16 : index
      %45 = vector.load %arg7[%c0_33, %c16] : memref<64x36xf32, #tpu.memory_space<vmem>>, vector<64x4xf32>
      tpu.vector_store %arg7[%c0_33, %c16], %44 {strides = array<i32>} : memref<64x36xf32, #tpu.memory_space<vmem>>, vector<64x4xf32>,
      %c1_i32_34 = arith.constant 1 : i32
      %46 = arith.addi %1, %c1_i32_34 : i32
      %c0_35 = arith.constant 0 : index
      %47 = arith.index_cast %46 : i32 to index
      %c2_36 = arith.constant 2 : index
      %c0_37 = arith.constant 0 : index
      %48 = vector.load %arg3[%c0_35, %47, %c2_36, %c0_37] : memref<1x10x10x4xf32, #tpu.memory_space<vmem>>, vector<1x8x8x4xf32>
      %49 = vector.shape_cast %48 : vector<1x8x8x4xf32> to vector<8x8x4xf32>
      %50 = vector.shape_cast %49 : vector<8x8x4xf32> to vector<64x4xf32>
      %c0_38 = arith.constant 0 : index
      %c20 = arith.constant 20 : index
      %51 = vector.load %arg7[%c0_38, %c20] : memref<64x36xf32, #tpu.memory_space<vmem>>, vector<64x4xf32>
      tpu.vector_store %arg7[%c0_38, %c20], %50 {strides = array<i32>} : memref<64x36xf32, #tpu.memory_space<vmem>>, vector<64x4xf32>,
      %c2_i32 = arith.constant 2 : i32
      %52 = arith.addi %1, %c2_i32 : i32
      %c0_39 = arith.constant 0 : index
      %53 = arith.index_cast %52 : i32 to index
      %c0_40 = arith.constant 0 : index
      %c0_41 = arith.constant 0 : index
      %54 = vector.load %arg3[%c0_39, %53, %c0_40, %c0_41] : memref<1x10x10x4xf32, #tpu.memory_space<vmem>>, vector<1x8x8x4xf32>
      %55 = vector.shape_cast %54 : vector<1x8x8x4xf32> to vector<8x8x4xf32>
      %56 = vector.shape_cast %55 : vector<8x8x4xf32> to vector<64x4xf32>
      %c0_42 = arith.constant 0 : index
      %c24 = arith.constant 24 : index
      %57 = vector.load %arg7[%c0_42, %c24] : memref<64x36xf32, #tpu.memory_space<vmem>>, vector<64x4xf32>
      tpu.vector_store %arg7[%c0_42, %c24], %56 {strides = array<i32>} : memref<64x36xf32, #tpu.memory_space<vmem>>, vector<64x4xf32>,
      %c2_i32_43 = arith.constant 2 : i32
      %58 = arith.addi %1, %c2_i32_43 : i32
      %c0_44 = arith.constant 0 : index
      %59 = arith.index_cast %58 : i32 to index
      %c1_45 = arith.constant 1 : index
      %c0_46 = arith.constant 0 : index
      %60 = vector.load %arg3[%c0_44, %59, %c1_45, %c0_46] : memref<1x10x10x4xf32, #tpu.memory_space<vmem>>, vector<1x8x8x4xf32>
      %61 = vector.shape_cast %60 : vector<1x8x8x4xf32> to vector<8x8x4xf32>
      %62 = vector.shape_cast %61 : vector<8x8x4xf32> to vector<64x4xf32>
      %c0_47 = arith.constant 0 : index
      %c28 = arith.constant 28 : index
      %63 = vector.load %arg7[%c0_47, %c28] : memref<64x36xf32, #tpu.memory_space<vmem>>, vector<64x4xf32>
      tpu.vector_store %arg7[%c0_47, %c28], %62 {strides = array<i32>} : memref<64x36xf32, #tpu.memory_space<vmem>>, vector<64x4xf32>,
      %c2_i32_48 = arith.constant 2 : i32
      %64 = arith.addi %1, %c2_i32_48 : i32
      %c0_49 = arith.constant 0 : index
      %65 = arith.index_cast %64 : i32 to index
      %c2_50 = arith.constant 2 : index
      %c0_51 = arith.constant 0 : index
      %66 = vector.load %arg3[%c0_49, %65, %c2_50, %c0_51] : memref<1x10x10x4xf32, #tpu.memory_space<vmem>>, vector<1x8x8x4xf32>
      %67 = vector.shape_cast %66 : vector<1x8x8x4xf32> to vector<8x8x4xf32>
      %68 = vector.shape_cast %67 : vector<8x8x4xf32> to vector<64x4xf32>
      %c0_52 = arith.constant 0 : index
      %c32 = arith.constant 32 : index
      %69 = vector.load %arg7[%c0_52, %c32] : memref<64x36xf32, #tpu.memory_space<vmem>>, vector<64x4xf32>
      tpu.vector_store %arg7[%c0_52, %c32], %68 {strides = array<i32>} : memref<64x36xf32, #tpu.memory_space<vmem>>, vector<64x4xf32>,
    } else {
    }
    %c0 = arith.constant 0 : index
    %c0_1 = arith.constant 0 : index
    %5 = vector.load %arg7[%c0, %c0_1] : memref<64x36xf32, #tpu.memory_space<vmem>>, vector<64x36xf32>
    %c0_2 = arith.constant 0 : index
    %c0_3 = arith.constant 0 : index
    %6 = vector.load %arg4[%c0_2, %c0_3] : memref<36x128xf32, #tpu.memory_space<vmem>>, vector<36x128xf32>
    %cst = arith.constant dense<0.000000e+00> : vector<64x128xf32>
    %7 = tpu.matmul %5, %6, %cst {dimension_numbers = #tpu.dot_dimension_numbers<[1], [0], [0], [1], [0, 0, 1, 1], [], []>} : vector<64x36xf32>, vector<36x128xf32>, vector<64x128xf32> -> vector<64x128xf32>
    %c0_4 = arith.constant 0 : index
    %c0_5 = arith.constant 0 : index
    %8 = vector.load %arg5[%c0_4, %c0_5] : memref<1x128xf32, #tpu.memory_space<vmem>>, vector<1x128xf32>
    %9 = vector.broadcast %8 : vector<1x128xf32> to vector<64x128xf32>
    %10 = arith.addf %7, %9 : vector<64x128xf32>
    %cst_6 = arith.constant 0.000000e+00 : f32
    %11 = vector.broadcast %cst_6 : f32 to vector<64x128xf32>
    %12 = arith.maximumf %10, %11 : vector<64x128xf32>
    %13 = vector.extract_strided_slice %12 {offsets = [0, 0], sizes = [64, 8], strides = [1, 1]} : vector<64x128xf32> to vector<64x8xf32>
    %14 = vector.shape_cast %13 : vector<64x8xf32> to vector<1x8x8x8xf32>
    %c0_7 = arith.constant 0 : index
    %c0_8 = arith.constant 0 : index
    %c0_9 = arith.constant 0 : index
    %c0_10 = arith.constant 0 : index
    %15 = vector.load %arg6[%c0_7, %c0_8, %c0_9, %c0_10] : memref<1x8x8x8xf32, #tpu.memory_space<vmem>>, vector<1x8x8x8xf32>
    tpu.vector_store %arg6[%c0_7, %c0_8, %c0_9, %c0_10], %14 {strides = array<i32>} : memref<1x8x8x8xf32, #tpu.memory_space<vmem>>, vector<1x8x8x8xf32>,
    return
  }
  func.func @transform_0(%arg0: i32, %arg1: i32, %arg2: i32) -> (i32, i32, i32, i32) {
    %c0_i32 = arith.constant 0 : i32
    %c0_i32_0 = arith.constant 0 : i32
    %c0_i32_1 = arith.constant 0 : i32
    %c0_i32_2 = arith.constant 0 : i32
    return %arg0, %c0_i32, %c0_i32_0, %c0_i32_1 : i32, i32, i32, i32
  }
  func.func @transform_1(%arg0: i32, %arg1: i32, %arg2: i32) -> (i32, i32) {
    %c0_i32 = arith.constant 0 : i32
    %c0_i32_0 = arith.constant 0 : i32
    return %c0_i32, %arg2 : i32, i32
  }
  func.func @transform_2(%arg0: i32, %arg1: i32, %arg2: i32) -> (i32, i32) {
    %c0_i32 = arith.constant 0 : i32
    %c0_i32_0 = arith.constant 0 : i32
    return %c0_i32, %arg2 : i32, i32
  }
  func.func @transform_3(%arg0: i32, %arg1: i32, %arg2: i32) -> (i32, i32, i32, i32) {
    %c0_i32 = arith.constant 0 : i32
    %c0_i32_0 = arith.constant 0 : i32
    return %arg0, %arg1, %c0_i32, %arg2 : i32, i32, i32, i32
  }
}

</mosaic_0001>

<bundles_post_ra>
// kernel: tpu_custom_call.1
= control target key start
LH: loop header
LB: loop body
LE: loop exit
PB: predicated region body
PF: predicated region fallthrough
CT: control target
= control target key end

     0   :  { %8 = vsyncpa [#allocation4], 0  ;;  %s1540_s0 = inlined_call_operand.vmem [shape: f32[2,10,10,4], index: 0, kind: input, shape index: {}]   ;;  %s1541_s1 = inlined_call_operand.vmem [shape: f32[36,128], index: 1, kind: input, shape index: {}]   ;;  %s1542_s2 = inlined_call_operand.vmem [shape: f32[1,128], index: 2, kind: input, shape index: {}]   ;;  %s1543_s3 = inlined_call_operand.hbm [shape: f32[2,8,8,8], index: 3, kind: output, shape index: {}]  }
   0x1   :  { %10 = vsyncpa [#allocation4 + $0x1], 0  ;;  %s1145_s12 = smov 0   ;;  %s1147_s13 = smov 0  }
   0x2   :  { %s1149_s14 = smov 0   ;;  %s1151_s15 = smov 0  }
   0x3   :  { %s1153_s16 = smov 0   ;;  %s1155_s17 = smov 0  }
   0x4 LB: > { %s883_s18 = sadd.s32 4294967295, %s1114_s17   ;;  %s884_s19 = sadd.s32 4294967294, %s1114_s17   ;;  %s1114_s17 = sphi %s1155_s17, %s16_s17   ;;  %s1110_s16 = sphi %s1153_s16, %s1550_s16   ;;  %s1106_s15 = sphi %s1151_s15, %s1549_s15   ;;  %s1102_s14 = sphi %s1149_s14, %s1548_s14   ;;  %s1098_s13 = sphi %s1147_s13, %s1547_s13   ;;  %s1094_s12 = sphi %s1145_s12, %s1546_s12  }
   0x5   : > { %s35_s20 = sadd.s32 1, %s1110_s16  ;;  %s124_s21 = sadd.s32 1, %s1102_s14 }
   0x6   : > { %p37_p0 = scmp.ge.s32.totalorder %s35_s20, 2  ;;  %p134_p1 = scmp.ne.s32.totalorder %s1102_s14, %s1098_s13 }
   0x7   : > { %p135_p2 = scmp.eq.s32.totalorder %s883_s18, 1  ;;  %p140_p3 = scmp.ne.s32.totalorder %s1098_s13, %s1094_s12 }
   0x8   : > { %s1552_s20 = smov (%p37_p0, %s35_s20), 0  ;;  %p141_p5 = scmp.eq.s32.totalorder %s884_s19, 1 }
   0x9   : > { %p1185_p4 = por %p135_p2, %p134_p1  ;;  %s117_s23 = ssub.s32 %s1110_s16, %s1552_s20 }
   0xa   : > { %p889_p6 = scmp.ge.s32.totalorder %s1114_s17, 1  ;;  %p122_p7 = scmp.eq.s32.totalorder %s117_s23, 0 }
   0xb   : > { %p1192_p8 = por %p141_p5, %p140_p3  ;;  %p180_p9 = scmp.lt.s32.totalorder %s1114_s17, 3 }
   0xc   : > { %s1198_s25 = scalar_select %p122_p7, %s1102_s14, %s124_s21  }
   0xd   : > { %p181_p10 = pnand %p889_p6, %p180_p9 }
   0xe   : > { %p211_p11 = scmp.lt.s32.totalorder (!%p181_p10), %s1106_s15, 1  ;;  %s1116_s4 = smov (!%p181_p10), 4  }
   0xf   : > { %184 = sbr.rel (%p181_p10) target bundleno = 451 (0x1c3), region = 32  ;;  %s1117_s5 = smov (!%p181_p10), 8  }
  0x10   : > { %s1118_s6 = smov (!%p181_p10), 12   ;;  %s1119_s7 = smov (!%p181_p10), 16  }
  0x11   : > { %s1120_s8 = smov (!%p181_p10), 20   ;;  %s1121_s9 = smov (!%p181_p10), 24  }
  0x12   : > { %s1122_s10 = smov (!%p181_p10), 28   ;;  %s1123_s11 = smov (!%p181_p10), 32  }
  0x14   : > { %s212_s26 = scalar_select %p211_p11, %s1106_s15, 1  ;;  %vm239_vm0 = vcmask 31744   ;;  %vm288_vm1 = vcmask 64544   ;;  %vm337_vm2 = vcmask 97344   ;;  %vm389_vm3 = vcmask 130144   ;;  %v657_v41 = vld [vmem:[%s1541_s1 + $0x18] sm:$0xff] }
  0x15   : > { %vm438_vm4 = vcmask 162944   ;;  %v658_v38 = vld [vmem:[%s1541_s1 + $0x20] sm:$0xf]  ;;  %vm688_vm5 = vcmask 1043456   ;;  %vm487_vm6 = vcmask 195744   ;;  %v656_v42 = vld [vmem:[%s1541_s1 + $0x10] sm:$0xff] }
  0x16   : > { %s970_s27 = smul.u32 160, %s212_s26  ;;  %956 = vmatpush.msk.msra.mxu2 %vm688_vm5, %v658_v38  ;;  %957 = vmatpush.msk.msra.mxu3 %vm688_vm5, %v658_v38  ;;  %v655_v45 = vld [vmem:[%s1541_s1 + $0x8] sm:$0xff]  ;;  %v654_v46 = vld [vmem:[%s1541_s1] sm:$0xff]  ;;  %vm539_vm7 = vcmask 228544   ;;  %vm588_vm8 = vcmask 261344   ;;  %vm637_vm9 = vcmask 294144  }
  0x17   : > { %940 = vmatpush.msk.msra.mxu0 %vm688_vm5, %v658_v38  ;;  %955 = vmatpush.msk.msra.mxu1 %vm688_vm5, %v658_v38  ;;  %vm663_vm10 = vcmask 293888   ;;  %vm741_vm11 = vcmask 64512  }
  0x18   : > { %s1205_s30 = scalar_lea.vmem %s1540_s0, %s970_s27  ;;  %959 = vmatpush.msra.mxu2 %v657_v41  ;;  %960 = vmatpush.msra.mxu3 %v657_v41 }
  0x19   : > { %v1208_v0 = vld [vmem:[%s1205_s30 + $0x41] sm:$0xff]  ;;  %v1218_v2 = vld [vmem:[%s1205_s30 + $0x50] sm:$0xff]  ;;  %704 = vmatpush.msra.mxu0 %v657_v41  ;;  %958 = vmatpush.msra.mxu1 %v657_v41 }
  0x1a   : > { %v1211_v1 = vld [vmem:[%s1205_s30 + $0x42] sm:$0xff]  ;;  %272 = vrot.lane.b32.xlu0 %v1208_v0, %s1116_s4  ;;  %373 = vrot.lane.b32.xlu2 %v1218_v2, %s1118_s6  ;;  %v1230_v5 = vld [vmem:[%s1205_s30 + $0x70] sm:$0xff]  ;;  %245 = vst.msk [vmem:[#allocation2 + $0x28] sm:$0xff] %vm239_vm0, %v1218_v2 }
  0x1b   : > { %321 = vrot.lane.b32.xlu1 %v1211_v1, %s1117_s5  ;;  %v254_v3 = vld [vmem:[%s1205_s30 + $0x61] sm:$0xff]  ;;  %v1235_v6 = vld [vmem:[%s1205_s30 + $0x51] sm:$0xff]  ;;  %247 = vst.msk [vmem:[#allocation2 + $0x38] sm:$0xff] %vm239_vm0, %v1230_v5  ;;  %962 = vmatpush.msra.mxu2 %v656_v42 }
  0x1c   : > { %v1224_v4 = vld [vmem:[%s1205_s30 + $0x62] sm:$0xff]  ;;  %v1238_v7 = vld [vmem:[%s1205_s30 + $0x71] sm:$0xff]  ;;  %963 = vmatpush.msra.mxu3 %v656_v42  ;;  %705 = vmatpush.msra.mxu0 %v656_v42 }
  0x1d   : > { %v1245_v8 = vld [vmem:[%s1205_s30 + $0x52] sm:$0xff]  ;;  %v920_v10 = vld [vmem:[%s1205_s30 + $0x60] sm:$0xff]  ;;  %961 = vmatpush.msra.mxu1 %v656_v42  ;;  %965 = vmatpush.msra.mxu2 %v655_v45 }
  0x1e   : > { %v1250_v9 = vld [vmem:[%s1205_s30 + $0x72] sm:$0xff]  ;;  %v922_v11 = vld [vmem:[%s1205_s30 + $0x80] sm:$0xff]  ;;  %246 = vst.msk [vmem:[#allocation2 + $0x30] sm:$0xff] %vm239_vm0, %v920_v10  ;;  %966 = vmatpush.msra.mxu3 %v655_v45  ;;  %706 = vmatpush.msra.mxu0 %v655_v45 }
  0x1f   : > { %v248_v12 = vld [vmem:[%s1205_s30 + $0x1] sm:$0xff]  ;;  %v892_v18 = vld [vmem:[%s1205_s30 + $0x10] sm:$0xff]  ;;  %964 = vmatpush.msra.mxu1 %v655_v45  ;;  %968 = vmatpush.msra.mxu2 %v654_v46 }
  0x20   : > { %v1260_v13 = vld [vmem:[%s1205_s30 + $0x21] sm:$0xff]  ;;  %v1286_v19 = vld [vmem:[%s1205_s30 + $0x30] sm:$0xff]  ;;  %241 = vst.msk [vmem:[#allocation2 + $0x8] sm:$0xff] %vm239_vm0, %v892_v18  ;;  %969 = vmatpush.msra.mxu3 %v654_v46  ;;  %707 = vmatpush.msra.mxu0 %v654_v46 }
  0x21   : > { %v930_v14 = vld [vmem:[%s1205_s30 + $0x81] sm:$0xff]  ;;  %v900_v20 = vld [vmem:[%s1205_s30 + $0x11] sm:$0xff]  ;;  %243 = vst.msk [vmem:[#allocation2 + $0x18] sm:$0xff] %vm239_vm0, %v1286_v19  ;;  %967 = vmatpush.msra.mxu1 %v654_v46 }
  0x22   : > { %276 = vrot.lane.b32.xlu0 %v254_v3, %s1116_s4  ;;  %377 = vrot.lane.b32.xlu2 %v1230_v5, %s1118_s6  ;;  %v297_v15 = vld [vmem:[%s1205_s30 + $0x2] sm:$0xff]  ;;  %v1297_v21 = vld [vmem:[%s1205_s30 + $0x31] sm:$0xff] }
  0x23   : > { %325 = vrot.lane.b32.xlu1 %v1224_v4, %s1117_s5  ;;  %v1271_v16 = vld [vmem:[%s1205_s30 + $0x22] sm:$0xff]  ;;  %v908_v22 = vld [vmem:[%s1205_s30 + $0x12] sm:$0xff] }
  0x24   : > { %v938_v17 = vld [vmem:[%s1205_s30 + $0x82] sm:$0xff]  ;;  %v1305_v23 = vld [vmem:[%s1205_s30 + $0x32] sm:$0xff] }
  0x25   : > { %v1311_v24 = vld [vmem:[%s1205_s30 + $0x40] sm:$0xff]  ;;  %v923_v28 = vld [vmem:[%s1205_s30 + $0x90] sm:$0xff] }
  0x26   : > { %v1315_v25 = vld [vmem:[%s1205_s30 + $0x20] sm:$0xff]  ;;  %244 = vst.msk [vmem:[#allocation2 + $0x20] sm:$0xff] %vm239_vm0, %v1311_v24  ;;  %v931_v34 = vld [vmem:[%s1205_s30 + $0x91] sm:$0xff] }
  0x27   : > { %242 = vst.msk [vmem:[#allocation2 + $0x10] sm:$0xff] %vm239_vm0, %v1315_v25  ;;  %v231_v30 = vld [vmem:[%s1205_s30] sm:$0xff]  ;;  %v939_v43 = vld [vmem:[%s1205_s30 + $0x92] sm:$0xff]  ;;  %s1056_s30 = scalar_lea.hbm %s1543_s3, 128 }
  0x28   : > { %240 = vst.msk [vmem:[#allocation2] sm:$0xff] %vm239_vm0, %v231_v30 }
  0x2a   : > { %422 = vrot.lane.b32.xlu0 %v1235_v6, %s1119_s7  ;;  %471 = vrot.lane.b32.xlu2 %v1245_v8, %s1120_s8 }
  0x2b   : > { %426 = vrot.lane.b32.xlu1 %v1238_v7, %s1119_s7 }
  0x32   : > { %475 = vrot.lane.b32.xlu0 %v1250_v9, %s1120_s8  ;;  %527 = vrot.lane.b32.xlu2 %v922_v11, %s1121_s9 }
  0x33   : > { %523 = vrot.lane.b32.xlu1 %v920_v10, %s1121_s9 }
  0x3a   : > { %264 = vrot.lane.b32.xlu0 %v248_v12, %s1116_s4  ;;  %572 = vrot.lane.b32.xlu2 %v254_v3, %s1122_s10 }
  0x3b   : > { %268 = vrot.lane.b32.xlu1 %v1260_v13, %s1116_s4 }
  0x42   : > { %576 = vrot.lane.b32.xlu0 %v930_v14, %s1122_s10  ;;  %317 = vrot.lane.b32.xlu2 %v1271_v16, %s1117_s5 }
  0x43   : > { %313 = vrot.lane.b32.xlu1 %v297_v15, %s1117_s5 }
  0x4a   : > { %621 = vrot.lane.b32.xlu0 %v1224_v4, %s1123_s11  ;;  %274 = vrot.lane.b32.xlu2 %v1235_v6, %s1116_s4 }
  0x4b   : > { %625 = vrot.lane.b32.xlu1 %v938_v17, %s1123_s11 }
  0x52   : > { %278 = vrot.lane.b32.xlu0 %v1238_v7, %s1116_s4  ;;  %369 = vrot.lane.b32.xlu2 %v1286_v19, %s1118_s6 }
  0x53   : > { %365 = vrot.lane.b32.xlu1 %v892_v18, %s1118_s6 }
  0x5a   : > { %323 = vrot.lane.b32.xlu0 %v1245_v8, %s1117_s5  ;;  %414 = vrot.lane.b32.xlu2 %v900_v20, %s1119_s7 }
  0x5b   : > { %327 = vrot.lane.b32.xlu1 %v1250_v9, %s1117_s5 }
  0x62   : > { %418 = vrot.lane.b32.xlu0 %v1297_v21, %s1119_s7  ;;  %379 = vrot.lane.b32.xlu2 %v922_v11, %s1118_s6 }
  0x63   : > { %375 = vrot.lane.b32.xlu1 %v920_v10, %s1118_s6 }
  0x6a   : > { %463 = vrot.lane.b32.xlu0 %v908_v22, %s1120_s8  ;;  %424 = vrot.lane.b32.xlu2 %v254_v3, %s1119_s7 }
  0x6b   : > { %467 = vrot.lane.b32.xlu1 %v1305_v23, %s1120_s8 }
  0x72   : > { %428 = vrot.lane.b32.xlu0 %v930_v14, %s1119_s7  ;;  %519 = vrot.lane.b32.xlu2 %v1311_v24, %s1121_s9 }
  0x73   : > { %515 = vrot.lane.b32.xlu1 %v1315_v25, %s1121_s9 }
  0x74   : > { %v374_v26 = vpop.permute.xlu2 %373 }
  0x7a   : > { %473 = vrot.lane.b32.xlu0 %v1224_v4, %s1120_s8  ;;  %564 = vrot.lane.b32.xlu2 %v1260_v13, %s1122_s10 }
  0x7b   : > { %477 = vrot.lane.b32.xlu1 %v938_v17, %s1120_s8 }
  0x7c   : > { %v378_v27 = vpop.permute.xlu2 %377 }
  0x82   : > { %568 = vrot.lane.b32.xlu0 %v1208_v0, %s1122_s10  ;;  %529 = vrot.lane.b32.xlu2 %v923_v28, %s1121_s9 }
  0x83   : > { %525 = vrot.lane.b32.xlu1 %v1230_v5, %s1121_s9 }
  0x84   : > { %v472_v29 = vpop.permute.xlu2 %471 }
  0x8a   : > { %613 = vrot.lane.b32.xlu0 %v1271_v16, %s1123_s11  ;;  %266 = vrot.lane.b32.xlu2 %v900_v20, %s1116_s4 }
  0x8b   : > { %617 = vrot.lane.b32.xlu1 %v1211_v1, %s1123_s11 }
  0x8c   : > { %v273_v31 = vpop.permute.xlu0 %272  ;;  %v528_v33 = vpop.permute.xlu2 %527 }
  0x8d   : > { %v322_v32 = vpop.permute.xlu1 %321  ;;  %293 = vst.msk [vmem:[#allocation2 + $0x20] sm:$0xff] %vm288_vm1, %v273_v31 }
  0x8e   : > { %342 = vst.msk [vmem:[#allocation2 + $0x20] sm:$0xff] %vm337_vm2, %v322_v32 }
  0x8f   : > { %394 = vst.msk [vmem:[#allocation2 + $0x20] sm:$0xff] %vm389_vm3, %v374_v26 }
  0x92   : > { %270 = vrot.lane.b32.xlu0 %v1297_v21, %s1116_s4  ;;  %578 = vrot.lane.b32.xlu2 %v931_v34, %s1122_s10 }
  0x93   : > { %574 = vrot.lane.b32.xlu1 %v1238_v7, %s1122_s10 }
  0x94   : > { %v277_v35 = vpop.permute.xlu0 %276  ;;  %v573_v37 = vpop.permute.xlu2 %572 }
  0x95   : > { %v326_v36 = vpop.permute.xlu1 %325  ;;  %295 = vst.msk [vmem:[#allocation2 + $0x30] sm:$0xff] %vm288_vm1, %v277_v35 }
  0x96   : > { %344 = vst.msk [vmem:[#allocation2 + $0x30] sm:$0xff] %vm337_vm2, %v326_v36 }
  0x97   : > { %396 = vst.msk [vmem:[#allocation2 + $0x30] sm:$0xff] %vm389_vm3, %v378_v27 }
  0x9a   : > { %315 = vrot.lane.b32.xlu0 %v908_v22, %s1117_s5  ;;  %623 = vrot.lane.b32.xlu2 %v1250_v9, %s1123_s11 }
  0x9b   : > { %319 = vrot.lane.b32.xlu1 %v1305_v23, %s1117_s5 }
  0x9c   : > { %v423_v39 = vpop.permute.xlu0 %422  ;;  %v318_v44 = vpop.permute.xlu2 %317 }
  0x9d   : > { %v427_v40 = vpop.permute.xlu1 %426  ;;  %443 = vst.msk [vmem:[#allocation2 + $0x20] sm:$0xff] %vm438_vm4, %v423_v39 }
  0x9e   : > { %445 = vst.msk [vmem:[#allocation2 + $0x30] sm:$0xff] %vm438_vm4, %v427_v40 }
  0x9f   : > { %492 = vst.msk [vmem:[#allocation2 + $0x20] sm:$0xff] %vm487_vm6, %v472_v29 }
  0xa2   : > { %627 = vrot.lane.b32.xlu0 %v939_v43, %s1123_s11  ;;  %371 = vrot.lane.b32.xlu2 %v1311_v24, %s1118_s6  ;;  %v1035_v43 = vld [vmem:[%s1542_s2] ss:$0 sm:$0xff] }
  0xa3   : > { %367 = vrot.lane.b32.xlu1 %v1315_v25, %s1118_s6  ;;  %s208_s6 = sand.u32 1, %s1098_s13  }
  0xa4   : > { %v476_v47 = vpop.permute.xlu0 %475  ;;  %v275_v49 = vpop.permute.xlu2 %274 }
  0xa5   : > { %v524_v48 = vpop.permute.xlu1 %523  ;;  %494 = vst.msk [vmem:[#allocation2 + $0x30] sm:$0xff] %vm487_vm6, %v476_v47 }
  0xa6   : > { %544 = vst.msk [vmem:[#allocation2 + $0x20] sm:$0xff] %vm539_vm7, %v524_v48 }
  0xa7   : > { %546 = vst.msk [vmem:[#allocation2 + $0x30] sm:$0xff] %vm539_vm7, %v528_v33 }
  0xa8   : > { %593 = vst.msk [vmem:[#allocation2 + $0x20] sm:$0xff] %vm588_vm8, %v573_v37 }
  0xa9   : > { %294 = vst.msk [vmem:[#allocation2 + $0x28] sm:$0xff] %vm288_vm1, %v275_v49 }
  0xaa   : > { %416 = vrot.lane.b32.xlu0 %v1260_v13, %s1119_s7  ;;  %465 = vrot.lane.b32.xlu2 %v1271_v16, %s1120_s8 }
  0xab   : > { %420 = vrot.lane.b32.xlu1 %v1208_v0, %s1119_s7 }
  0xac   : > { %v265_v50 = vpop.permute.xlu0 %264  ;;  %v370_v52 = vpop.permute.xlu2 %369 }
  0xad   : > { %v269_v51 = vpop.permute.xlu1 %268  ;;  %289 = vst.msk [vmem:[#allocation2] sm:$0xff] %vm288_vm1, %v265_v50 }
  0xae   : > { %291 = vst.msk [vmem:[#allocation2 + $0x10] sm:$0xff] %vm288_vm1, %v269_v51 }
  0xaf   : > { %340 = vst.msk [vmem:[#allocation2 + $0x10] sm:$0xff] %vm337_vm2, %v318_v44 }
  0xb0   : > { %392 = vst.msk [vmem:[#allocation2 + $0x10] sm:$0xff] %vm389_vm3, %v370_v52 }
  0xb2   : > { %469 = vrot.lane.b32.xlu0 %v1211_v1, %s1120_s8  ;;  %521 = vrot.lane.b32.xlu2 %v1218_v2, %s1121_s9 }
  0xb3   : > { %517 = vrot.lane.b32.xlu1 %v1286_v19, %s1121_s9  ;;  %s890_s9 = sshll.u32 %s208_s6, 6 }
  0xb4   : > { %v577_v53 = vpop.permute.xlu0 %576  ;;  %v415_v55 = vpop.permute.xlu2 %414 }
  0xb5   : > { %v314_v54 = vpop.permute.xlu1 %313  ;;  %595 = vst.msk [vmem:[#allocation2 + $0x30] sm:$0xff] %vm588_vm8, %v577_v53 }
  0xb6   : > { %338 = vst.msk [vmem:[#allocation2] sm:$0xff] %vm337_vm2, %v314_v54 }
  0xba   : > { %566 = vrot.lane.b32.xlu0 %v1297_v21, %s1122_s10  ;;  %615 = vrot.lane.b32.xlu2 %v1305_v23, %s1123_s11 }
  0xbb   : > { %570 = vrot.lane.b32.xlu1 %v1235_v6, %s1122_s10  ;;  %s1482_s10 = scalar_lea.vmem [#allocation3], %s890_s9 }
  0xbc   : > { %v622_v56 = vpop.permute.xlu0 %621  ;;  %v380_v58 = vpop.permute.xlu2 %379  ;;  %s766_s23 = sshll.u32 %s1482_s10, 4  ;;  %s767_s23 = int_to_ptr.vmem [resolvable:$true] %s766_s23 }
  0xbd   : > { %v626_v57 = vpop.permute.xlu1 %625  ;;  %642 = vst.msk [vmem:[#allocation2 + $0x20] sm:$0xff] %vm637_vm9, %v622_v56 }
  0xbe   : > { %644 = vst.msk [vmem:[#allocation2 + $0x30] sm:$0xff] %vm637_vm9, %v626_v57 }
  0xc2   : > { %619 = vrot.lane.b32.xlu0 %v1245_v8, %s1123_s11  ;;  %s954_s11 = sshll.u32 %s1106_s15, 6  ;;  %s751_s15 = scalar_lea.sflag [#allocation4], %s208_s6 }
  0xc3   : > { %s765_s21 = scalar_lea.hbm %s1543_s3, %s954_s11 }
  0xc4   : > { %v279_v59 = vpop.permute.xlu0 %278  ;;  %v650_v60 = vld [vmem:[#allocation2 + $0x20] sm:$0xff]  ;;  %v425_v63 = vpop.permute.xlu2 %424  ;;  %s768_s26 = sshll.u32 %s765_s21, 4  ;;  %s769_s26 = int_to_ptr.hbm [resolvable:$true] %s768_s26 }
  0xc5   : > { %v366_v61 = vpop.permute.xlu1 %365  ;;  %296 = vst.msk [vmem:[#allocation2 + $0x38] sm:$0xff] %vm288_vm1, %v279_v59  ;;  %945 = vmatmul.msk.f32.vlgmr.msra.gmra.mxu2 %vm663_vm10, %v650_v60  ;;  %v652_v62 = vld [vmem:[#allocation2 + $0x30] sm:$0xff]  ;;  %s1050_s27 = sshra.s32 %s769_s26, 4  ;;  %s1051_s27 = int_to_ptr.hbm [resolvable:$true] %s1050_s27 }
  0xc6   : > { %390 = vst.msk [vmem:[#allocation2] sm:$0xff] %vm389_vm3, %v366_v61  ;;  %947 = vmatmul.msk.f32.vlgmr.msra.gmra.mxu3 %vm663_vm10, %v652_v62  ;;  %s1052_s28 = scalar_lea.hbm %s1051_s27, 64  ;;  %p1057_p1 = scmp.lt.s32.totalorder %s1051_s27, %s1543_s3 }
  0xc7   : > { %439 = vst.msk [vmem:[#allocation2] sm:$0xff] %vm438_vm4, %v415_v55  ;;  %p1053_p12 = scmp.ne.s32.totalorder %s1051_s27, %s1052_s28  ;;  %p1058_p2 = scmp.lt.s32.totalorder %s1056_s30, %s1052_s28 }
  0xc9   : > { %p1054_p13 = pnand %p1053_p12, %p1185_p4  ;;  %p1059_p3 = por %p1058_p2, %p1057_p1 }
  0xcb   : > { %p1055_p0 = pneg %p1054_p13 }
  0xcc   : > { %v324_v0 = vpop.permute.xlu0 %323  ;;  %v520_v2 = vpop.permute.xlu2 %519 }
  0xcd   : > { %v328_v1 = vpop.permute.xlu1 %327  ;;  %343 = vst.msk [vmem:[#allocation2 + $0x28] sm:$0xff] %vm337_vm2, %v324_v0  ;;  %p1060_p5 = pnand %p1059_p3, %p1055_p0 }
  0xce   : > { %345 = vst.msk [vmem:[#allocation2 + $0x38] sm:$0xff] %vm337_vm2, %v328_v1 }
  0xcf   : > { %397 = vst.msk [vmem:[#allocation2 + $0x38] sm:$0xff] %vm389_vm3, %v380_v58 }
  0xd4   : > { %v419_v3 = vpop.permute.xlu0 %418  ;;  %v565_v5 = vpop.permute.xlu2 %564 }
  0xd5   : > { %v376_v4 = vpop.permute.xlu1 %375  ;;  %441 = vst.msk [vmem:[#allocation2 + $0x10] sm:$0xff] %vm438_vm4, %v419_v3 }
  0xd6   : > { %395 = vst.msk [vmem:[#allocation2 + $0x28] sm:$0xff] %vm389_vm3, %v376_v4 }
  0xd7   : > { %444 = vst.msk [vmem:[#allocation2 + $0x28] sm:$0xff] %vm438_vm4, %v425_v63 }
  0xdc   : > { %v464_v6 = vpop.permute.xlu0 %463  ;;  %v530_v8 = vpop.permute.xlu2 %529 }
  0xdd   : > { %v468_v7 = vpop.permute.xlu1 %467  ;;  %488 = vst.msk [vmem:[#allocation2] sm:$0xff] %vm487_vm6, %v464_v6 }
  0xde   : > { %490 = vst.msk [vmem:[#allocation2 + $0x10] sm:$0xff] %vm487_vm6, %v468_v7 }
  0xdf   : > { %542 = vst.msk [vmem:[#allocation2 + $0x10] sm:$0xff] %vm539_vm7, %v520_v2 }
  0xe4   : > { %v429_v9 = vpop.permute.xlu0 %428  ;;  %v267_v11 = vpop.permute.xlu2 %266 }
  0xe5   : > { %v516_v10 = vpop.permute.xlu1 %515  ;;  %446 = vst.msk [vmem:[#allocation2 + $0x38] sm:$0xff] %vm438_vm4, %v429_v9 }
  0xe6   : > { %540 = vst.msk [vmem:[#allocation2] sm:$0xff] %vm539_vm7, %v516_v10 }
  0xe7   : > { %589 = vst.msk [vmem:[#allocation2] sm:$0xff] %vm588_vm8, %v565_v5 }
  0xe8   : > { %290 = vst.msk [vmem:[#allocation2 + $0x8] sm:$0xff] %vm288_vm1, %v267_v11 }
  0xec   : > { %v474_v12 = vpop.permute.xlu0 %473  ;;  %v579_v14 = vpop.permute.xlu2 %578 }
  0xed   : > { %v478_v13 = vpop.permute.xlu1 %477  ;;  %493 = vst.msk [vmem:[#allocation2 + $0x28] sm:$0xff] %vm487_vm6, %v474_v12 }
  0xee   : > { %495 = vst.msk [vmem:[#allocation2 + $0x38] sm:$0xff] %vm487_vm6, %v478_v13 }
  0xef   : > { %547 = vst.msk [vmem:[#allocation2 + $0x38] sm:$0xff] %vm539_vm7, %v530_v8 }
  0xf0   : > { %596 = vst.msk [vmem:[#allocation2 + $0x38] sm:$0xff] %vm588_vm8, %v579_v14 }
  0xf4   : > { %v569_v15 = vpop.permute.xlu0 %568  ;;  %v624_v19 = vpop.permute.xlu2 %623 }
  0xf5   : > { %v526_v16 = vpop.permute.xlu1 %525  ;;  %591 = vst.msk [vmem:[#allocation2 + $0x10] sm:$0xff] %vm588_vm8, %v569_v15 }
  0xf6   : > { %545 = vst.msk [vmem:[#allocation2 + $0x28] sm:$0xff] %vm539_vm7, %v526_v16 }
  0xfc   : > { %v614_v17 = vpop.permute.xlu0 %613  ;;  %v372_v24 = vpop.permute.xlu2 %371 }
  0xfd   : > { %v618_v18 = vpop.permute.xlu1 %617  ;;  %638 = vst.msk [vmem:[#allocation2] sm:$0xff] %vm637_vm9, %v614_v17 }
  0xfe   : > { %640 = vst.msk [vmem:[#allocation2 + $0x10] sm:$0xff] %vm637_vm9, %v618_v18 }
 0x104   : > { %v271_v20 = vpop.permute.xlu0 %270  ;;  %v646_v21 = vld [vmem:[#allocation2] sm:$0xff]  ;;  %v466_v30 = vpop.permute.xlu2 %465 }
 0x105   : > { %v575_v22 = vpop.permute.xlu1 %574  ;;  %292 = vst.msk [vmem:[#allocation2 + $0x18] sm:$0xff] %vm288_vm1, %v271_v20  ;;  %941 = vmatmul.msk.f32.vlgmr.msra.gmra.mxu0 %vm663_vm10, %v646_v21  ;;  %v648_v23 = vld [vmem:[#allocation2 + $0x10] sm:$0xff] }
 0x106   : > { %594 = vst.msk [vmem:[#allocation2 + $0x28] sm:$0xff] %vm588_vm8, %v575_v22  ;;  %943 = vmatmul.msk.f32.vlgmr.msra.gmra.mxu1 %vm663_vm10, %v648_v23 }
 0x107   : > { %643 = vst.msk [vmem:[#allocation2 + $0x28] sm:$0xff] %vm637_vm9, %v624_v19 }
 0x10c   : > { %v316_v25 = vpop.permute.xlu0 %315  ;;  %v522_v34 = vpop.permute.xlu2 %521 }
 0x10d   : > { %v320_v26 = vpop.permute.xlu1 %319  ;;  %339 = vst.msk [vmem:[#allocation2 + $0x8] sm:$0xff] %vm337_vm2, %v316_v25 }
 0x10e   : > { %341 = vst.msk [vmem:[#allocation2 + $0x18] sm:$0xff] %vm337_vm2, %v320_v26  ;;  %v651_v27 = vld [vmem:[#allocation2 + $0x28] sm:$0xff] }
 0x10f   : > { %393 = vst.msk [vmem:[#allocation2 + $0x18] sm:$0xff] %vm389_vm3, %v372_v24  ;;  %946 = vmatmul.msk.f32.gmra.mxu2 %vm663_vm10, %v651_v27 }
 0x114   : > { %v628_v28 = vpop.permute.xlu0 %627  ;;  %v616_v37 = vpop.permute.xlu2 %615 }
 0x115   : > { %v368_v29 = vpop.permute.xlu1 %367  ;;  %645 = vst.msk [vmem:[#allocation2 + $0x38] sm:$0xff] %vm637_vm9, %v628_v28 }
 0x116   : > { %391 = vst.msk [vmem:[#allocation2 + $0x8] sm:$0xff] %vm389_vm3, %v368_v29 }
 0x11c   : > { %v417_v31 = vpop.permute.xlu0 %416  ;;  %v653_v32 = vld [vmem:[#allocation2 + $0x38] sm:$0xff] }
 0x11d   : > { %v421_v33 = vpop.permute.xlu1 %420  ;;  %440 = vst.msk [vmem:[#allocation2 + $0x8] sm:$0xff] %vm438_vm4, %v417_v31  ;;  %948 = vmatmul.msk.f32.gmra.mxu3 %vm663_vm10, %v653_v32 }
 0x11e   : > { %442 = vst.msk [vmem:[#allocation2 + $0x18] sm:$0xff] %vm438_vm4, %v421_v33 }
 0x11f   : > { %489 = vst.msk [vmem:[#allocation2 + $0x8] sm:$0xff] %vm487_vm6, %v466_v30 }
 0x124   : > { %v470_v35 = vpop.permute.xlu0 %469 }
 0x125   : > { %v518_v36 = vpop.permute.xlu1 %517  ;;  %491 = vst.msk [vmem:[#allocation2 + $0x18] sm:$0xff] %vm487_vm6, %v470_v35 }
 0x126   : > { %541 = vst.msk [vmem:[#allocation2 + $0x8] sm:$0xff] %vm539_vm7, %v518_v36 }
 0x127   : > { %543 = vst.msk [vmem:[#allocation2 + $0x18] sm:$0xff] %vm539_vm7, %v522_v34 }
 0x12c   : > { %v567_v38 = vpop.permute.xlu0 %566 }
 0x12d   : > { %v571_v39 = vpop.permute.xlu1 %570  ;;  %590 = vst.msk [vmem:[#allocation2 + $0x8] sm:$0xff] %vm588_vm8, %v567_v38 }
 0x12e   : > { %592 = vst.msk [vmem:[#allocation2 + $0x18] sm:$0xff] %vm588_vm8, %v571_v39 }
 0x12f   : > { %639 = vst.msk [vmem:[#allocation2 + $0x8] sm:$0xff] %vm637_vm9, %v616_v37 }
 0x134   : > { %v620_v40 = vpop.permute.xlu0 %619 }
 0x135   : > { %641 = vst.msk [vmem:[#allocation2 + $0x18] sm:$0xff] %vm637_vm9, %v620_v40 }
 0x136   : > { %v647_v41 = vld [vmem:[#allocation2 + $0x8] sm:$0xff] }
 0x137   : > { %942 = vmatmul.msk.f32.gmra.mxu0 %vm663_vm10, %v647_v41 }
 0x13c   : > { %v649_v42 = vld [vmem:[#allocation2 + $0x18] sm:$0xff] }
 0x13d   : > { %944 = vmatmul.msk.f32.gmra.mxu1 %vm663_vm10, %v649_v42 }
 0x148   : > { %v721_v44 = vpop.f32.mrf.mxu2 }
 0x149   : > { %v722_v45 = vadd.f32 %v1035_v43, %v721_v44  ;;  %v727_v46 = vpop.f32.mrf.mxu3 }
 0x14a   : > { %v728_v47 = vadd.f32 %v1035_v43, %v727_v46 }
 0x14b   : > { %v737_v48 = vmax.f32 %v722_v45, 0.0 }
 0x14c   : > { %v739_v49 = vmax.f32 %v728_v47, 0.0 }
 0x14d   : > { %746 = vst.msk [vmem:[%s1482_s10 + $0x20] sm:$0xff] %vm741_vm11, %v737_v48 }
 0x14e   : > { %748 = vst.msk [vmem:[%s1482_s10 + $0x30] sm:$0xff] %vm741_vm11, %v739_v49 }
 0x182   : > { %v709_v50 = vpop.f32.mrf.mxu0 }
 0x183   : > { %v710_v51 = vadd.f32 %v1035_v43, %v709_v50  ;;  %v715_v52 = vpop.f32.mrf.mxu1 }
 0x184   : > { %v716_v53 = vadd.f32 %v1035_v43, %v715_v52 }
 0x185   : > { %v733_v54 = vmax.f32 %v710_v51, 0.0 }
 0x186   : > { %v735_v55 = vmax.f32 %v716_v53, 0.0 }
 0x187   : > { %742 = vst.msk [vmem:[%s1482_s10] sm:$0xff] %vm741_vm11, %v733_v54 }
 0x188   : > { %744 = vst.msk [vmem:[%s1482_s10 + $0x10] sm:$0xff] %vm741_vm11, %v735_v55 }
 0x192   : > { %v724_v56 = vpop.f32.mrf.mxu2 }
 0x193   : > { %v725_v57 = vadd.f32 %v1035_v43, %v724_v56 }
 0x195   : > { %v738_v58 = vmax.f32 %v725_v57, 0.0 }
 0x197   : > { %747 = vst.msk [vmem:[%s1482_s10 + $0x28] sm:$0xff] %vm741_vm11, %v738_v58 }
 0x1a0   : > { %v730_v59 = vpop.f32.mrf.mxu3 }
 0x1a1   : > { %v731_v60 = vadd.f32 %v1035_v43, %v730_v59 }
 0x1a3   : > { %v740_v61 = vmax.f32 %v731_v60, 0.0 }
 0x1a5   : > { %749 = vst.msk [vmem:[%s1482_s10 + $0x38] sm:$0xff] %vm741_vm11, %v740_v61 }
 0x1b4   : > { %v712_v62 = vpop.f32.mrf.mxu0 }
 0x1b5   : > { %v713_v63 = vadd.f32 %v1035_v43, %v712_v62 }
 0x1b7   : > { %v734_v0 = vmax.f32 %v713_v63, 0.0 }
 0x1b9   : > { %743 = vst.msk [vmem:[%s1482_s10 + $0x8] sm:$0xff] %vm741_vm11, %v734_v0 }
 0x1ba   : > { %v718_v1 = vpop.f32.mrf.mxu1 }
 0x1bb   : > { %v719_v2 = vadd.f32 %v1035_v43, %v718_v1 }
 0x1bd   : > { %v736_v3 = vmax.f32 %v719_v2, 0.0 }
 0x1bf   : > { %745 = vst.msk [vmem:[%s1482_s10 + $0x18] sm:$0xff] %vm741_vm11, %v736_v3 }
 0x1c0   : > { %1063 = shalt.err (!%p1060_p5)
}
 0x1c1   : > { %s1124_s6 = smov 128  }
 0x1c2   : > { %971 = dma.vmem_to_hbm [thread:$0]  (%p1185_p4), %s767_s23, 1024, %s769_s26, %s751_s15, %s1124_s6, %s1124_s6, %s1117_s5  }
 0x1c3 PF: > { %p977_p6 = scmp.ge.s32.totalorder %s1114_s17, 2  ;;  %s783_s9 = sand.u32 1, %s1094_s12  }
 0x1c4   : > { %s784_s10 = scalar_lea.sflag [#allocation4], %s783_s9 }
 0x1c5   : > { %p974_p7 = pnand %p977_p6, %p1192_p8 }
 0x1c7   : > { %p975_p9 = pneg %p974_p7 }
 0x1c9   : > { %1089 = dma.done.wait (%p975_p9), %s784_s10, 1024  }
 0x1ca   : > { %1091 = vsyncadd (%p975_p9), %s784_s10, 4294966272  ;;  %s16_s17 = sadd.s32 1, %s1114_s17   ;;  %s1546_s12 = smov %s1098_s13 }
 0x1cb   : > { %p13_p10 = scmp.ge.s32.totalorder %s16_s17, 4   ;;  %s1547_s13 = smov %s1102_s14 }
 0x1cc   : > { %s1548_s14 = smov %s1198_s25  ;;  %s1549_s15 = smov %s1110_s16 }
 0x1cd   : > { %s1550_s16 = smov %s1552_s20  ;;  %15 = sbr.rel (!%p13_p10) target bundleno = 4 (0x4), region = 80 }
 0x1d2   :  { %790 = vsyncpa [#allocation4], 1 }
 0x1d3   :  { %792 = vsyncpa [#allocation4 + $0x1], 1 }

</bundles_post_ra>
